<compile_context>
chip_gen: v5e
topology: v5e:2x2
jax: 0.10.0
libtpu: 0.0.40
codegen_flags: <defaults>
</compile_context>

<pallas_src>
import jax
import jax.numpy as jnp
from jax.experimental import pallas as pl
from jax.experimental.pallas import tpu as pltpu


def _gating_kernel(x_ref, wv_ref, bv_ref, o_ref):
    # x_ref: (S, BB, H) tile of the (S, B, H) input for this batch block.
    # Mean over the seq axis directly on the tile layout (no transpose).
    x_mean = jnp.mean(x_ref[...].astype(jnp.float32), axis=0)          # (BB, H)
    # mean_i(context) == mean_s(V) == mean_s(x) @ Wv^T + bv  (exact identity).
    ctx_mean = jnp.dot(x_mean, wv_ref[...],
                       preferred_element_type=jnp.float32) + bv_ref[...]
    o_ref[...] = (x_mean + ctx_mean).astype(o_ref.dtype)


def _vmem_limit_bytes():
    """Generation-aware scoped-VMEM budget: ~3/4 of physical VMEM
    (~48 MiB on v7x's 64 MiB, ~96 MiB on v5e/v6e's 128 MiB)."""
    default = 48 * 1024 * 1024                      # safe on every generation
    try:
        cap = int(pltpu.get_tpu_info().vmem_capacity_bytes)
        if cap <= 0:
            return default
        return min(cap * 3 // 4, 100 * 1024 * 1024)
    except Exception:
        return default


def _pick_batch_block(B, S, H, vmem_limit_bytes):
    """Largest batch block BB such that
      (a) the double-buffered (S, BB, H) input tile + resident weight + output
          tile fit in ~half the VMEM budget,
      (b) BB is a multiple of 8 (or the full batch when B <= 8) so the block
          satisfies the (8, 128) constraint,
      (c) the grid has >= 2 steps when B permits, so the "parallel" batch axis
          can shard across v7x's two TensorCores."""
    if B <= 8:
        return B                                     # single full block is legal
    x_bytes_per_b = S * H * 4 * 2                    # f32 input tile, double-buffered
    out_bytes_per_b = H * 4 * 2                      # f32 output tile, double-buffered
    per_b = x_bytes_per_b + out_bytes_per_b
    resident = 2 * (H * H + H) * 4                   # weight + bias (double-buffered)
    budget = max(vmem_limit_bytes // 2 - resident, 8 * per_b)
    bb = max(8, (budget // per_b) // 8 * 8)
    # Prefer at least two grid steps (megacore sharding on v7x).
    two_step_cap = ((-(-B // 2)) + 7) // 8 * 8
    return min(bb, max(8, two_step_cap))


def gating_layer1(x_sbh, wq, bq, wk, bk, wv, bv):
    """x_sbh: (S, B, H) exactly as in the PyTorch module. Returns (B, H)."""
    del wq, bq, wk, bk        # cancel exactly (softmax(dim=1) then mean(dim=1))
    S, B, H = x_sbh.shape

    vmem_limit = _vmem_limit_bytes()
    BB = _pick_batch_block(B, S, H, vmem_limit)

    # Pad B up to a multiple of BB (zero batch rows are independent and the
    # corresponding output rows are sliced away), keeping every block legal.
    B_pad = -(-B // BB) * BB
    x_in = x_sbh
    if B_pad != B:
        x_in = jnp.pad(x_sbh, ((0, 0), (0, B_pad - B), (0, 0)))

    wv_t = wv.T                                  # (H, H), kernel computes x @ W^T
    bv2 = bv[None, :]                            # (1, H)

    full2d = lambda b: (0, 0)
    out = pl.pallas_call(
        _gating_kernel,
        out_shape=jax.ShapeDtypeStruct((B_pad, H), x_sbh.dtype),
        grid_spec=pltpu.PrefetchScalarGridSpec(
            num_scalar_prefetch=0,
            grid=(B_pad // BB,),
            in_specs=[
                pl.BlockSpec((S, BB, H), lambda b: (0, b, 0)),   # x tile (no HBM transpose)
                pl.BlockSpec((H, H), full2d),                    # Wv^T (constant index_map)
                pl.BlockSpec((1, H), full2d),                    # bv
            ],
            out_specs=pl.BlockSpec((BB, H), lambda b: (b, 0)),
        ),
        compiler_params=pltpu.CompilerParams(
            # Batch axis is embarrassingly parallel -> shards across v7x's 2 TCs
            # whenever the grid has >1 step; near-neutral on single-TC v5e/v6e.
            dimension_semantics=("parallel",),
            vmem_limit_bytes=vmem_limit,
        ),
    )(x_in, wv_t, bv2)

    return out[:B] if B_pad != B else out


def _reference(x_sbh, wq, bq, wk, bk, wv, bv):
    # Pure-JAX mirror of the full PyTorch forward (verification only; it keeps
    # the complete Q/K/softmax path so the algebraic collapse is checked too).
    Q = x_sbh @ wq.T + bq
    K = x_sbh @ wk.T + bk
    V = x_sbh @ wv.T + bv
    Qt = jnp.transpose(Q, (1, 0, 2))            # (B, S, H)
    Kt = jnp.transpose(K, (1, 0, 2))
    Vt = jnp.transpose(V, (1, 0, 2))
    scores = jnp.einsum("bih,bjh->bij", Qt, Kt) / jnp.sqrt(jnp.float32(K.shape[-1]))
    attn = jax.nn.softmax(scores, axis=1)       # torch Softmax(dim=1)
    ctx = jnp.einsum("bij,bjh->bih", attn, Vt)  # (B, S, H)
    ctx = jnp.transpose(ctx, (1, 0, 2))         # (S, B, H)
    return x_sbh.mean(axis=0) + ctx.mean(axis=0)  # (B, H)


if __name__ == "__main__":
    S, B, H = 8, 4, 32
    key = jax.random.PRNGKey(0)
    kx, kwq, kbq, kwk, kbk, kwv, kbv = jax.random.split(key, 7)

    x = jax.random.normal(kx, (S, B, H), dtype=jnp.float32)
    scale = 1.0 / jnp.sqrt(jnp.float32(H))
    wq = jax.random.uniform(kwq, (H, H), jnp.float32, -scale, scale)
    bq = jax.random.uniform(kbq, (H,), jnp.float32, -scale, scale)
    wk = jax.random.uniform(kwk, (H, H), jnp.float32, -scale, scale)
    bk = jax.random.uniform(kbk, (H,), jnp.float32, -scale, scale)
    wv = jax.random.uniform(kwv, (H, H), jnp.float32, -scale, scale)
    bv = jax.random.uniform(kbv, (H,), jnp.float32, -scale, scale)

    out = gating_layer1(x, wq, bq, wk, bk, wv, bv)
    out = jax.block_until_ready(out)

    ref = _reference(x, wq, bq, wk, bk, wv, bv)
    assert out.shape == (B, H)
    assert jnp.allclose(out, ref, atol=1e-5, rtol=1e-5), "mismatch vs reference"
    print("KERNEL_OK")
</pallas_src>

<mosaic_0001>
module attributes {stable_mosaic.version = 11 : i64} {
  func.func @_gating_kernel(%arg0: i32, %arg1: memref<8x4x32xf32, #tpu.memory_space<vmem>>, %arg2: memref<32x32xf32, #tpu.memory_space<vmem>>, %arg3: memref<1x32xf32, #tpu.memory_space<vmem>>, %arg4: memref<4x32xf32, #tpu.memory_space<vmem>>) attributes {dimension_semantics = [#tpu.dimension_semantics<parallel>], iteration_bounds = array<i64: 1>, scalar_prefetch = 0 : i64, scratch_operands = 0 : i64, tpu.core_type = #tpu.core_type<tc>, window_params = [{transform_indices = @transform_0, window_bounds = array<i64: 8, 4, 32>}, {pipeline_mode = #tpu.pipeline_mode<synchronous>, transform_indices = @transform_1, window_bounds = array<i64: 32, 32>}, {pipeline_mode = #tpu.pipeline_mode<synchronous>, transform_indices = @transform_2, window_bounds = array<i64: 1, 32>}, {transform_indices = @transform_3, window_bounds = array<i64: 4, 32>}]} {
    %c0 = arith.constant 0 : index
    %c0_0 = arith.constant 0 : index
    %c0_1 = arith.constant 0 : index
    %0 = vector.load %arg1[%c0, %c0_0, %c0_1] : memref<8x4x32xf32, #tpu.memory_space<vmem>>, vector<8x4x32xf32>
    %cst = arith.constant dense<0.000000e+00> : vector<4x32xf32>
    %1 = vector.multi_reduction <add>, %0, %cst [0] : vector<8x4x32xf32> to vector<4x32xf32>
    %cst_2 = arith.constant 8.000000e+00 : f32
    %2 = vector.broadcast %cst_2 : f32 to vector<4x32xf32>
    %3 = arith.divf %1, %2 : vector<4x32xf32>
    %c0_3 = arith.constant 0 : index
    %c0_4 = arith.constant 0 : index
    %4 = vector.load %arg2[%c0_3, %c0_4] : memref<32x32xf32, #tpu.memory_space<vmem>>, vector<32x32xf32>
    %cst_5 = arith.constant dense<0.000000e+00> : vector<4x32xf32>
    %5 = tpu.matmul %3, %4, %cst_5 {dimension_numbers = #tpu.dot_dimension_numbers<[1], [0], [0], [1], [0, 0, 1, 1], [], []>} : vector<4x32xf32>, vector<32x32xf32>, vector<4x32xf32> -> vector<4x32xf32>
    %c0_6 = arith.constant 0 : index
    %c0_7 = arith.constant 0 : index
    %6 = vector.load %arg3[%c0_6, %c0_7] : memref<1x32xf32, #tpu.memory_space<vmem>>, vector<1x32xf32>
    %7 = vector.broadcast %6 : vector<1x32xf32> to vector<4x32xf32>
    %8 = arith.addf %5, %7 : vector<4x32xf32>
    %9 = arith.addf %3, %8 : vector<4x32xf32>
    %c0_8 = arith.constant 0 : index
    %c0_9 = arith.constant 0 : index
    %10 = vector.load %arg4[%c0_8, %c0_9] : memref<4x32xf32, #tpu.memory_space<vmem>>, vector<4x32xf32>
    tpu.vector_store %arg4[%c0_8, %c0_9], %9 {strides = array<i32>} : memref<4x32xf32, #tpu.memory_space<vmem>>, vector<4x32xf32>,
    return
  }
  func.func @transform_0(%arg0: i32) -> (i32, i32, i32) {
    %c0_i32 = arith.constant 0 : i32
    %c0_i32_0 = arith.constant 0 : i32
    %c0_i32_1 = arith.constant 0 : i32
    return %c0_i32, %arg0, %c0_i32_0 : i32, i32, i32
  }
  func.func @transform_1(%arg0: i32) -> (i32, i32) {
    %c0_i32 = arith.constant 0 : i32
    %c0_i32_0 = arith.constant 0 : i32
    %c0_i32_1 = arith.constant 0 : i32
    return %c0_i32, %c0_i32_0 : i32, i32
  }
  func.func @transform_2(%arg0: i32) -> (i32, i32) {
    %c0_i32 = arith.constant 0 : i32
    %c0_i32_0 = arith.constant 0 : i32
    %c0_i32_1 = arith.constant 0 : i32
    return %c0_i32, %c0_i32_0 : i32, i32
  }
  func.func @transform_3(%arg0: i32) -> (i32, i32) {
    %c0_i32 = arith.constant 0 : i32
    %c0_i32_0 = arith.constant 0 : i32
    return %arg0, %c0_i32 : i32, i32
  }
}

</mosaic_0001>

<bundles_post_ra>
// kernel: tpu_custom_call.1
= control target key start
LH: loop header
LB: loop body
LE: loop exit
PB: predicated region body
PF: predicated region fallthrough
CT: control target
= control target key end

     0   :  { %8 = vsyncpa [#allocation3], 0  ;;  %s270_s0 = inlined_call_operand.hbm [shape: f32[8,4,32], index: 0, kind: input, shape index: {}]   ;;  %s271_s1 = inlined_call_operand.hbm [shape: f32[32,32], index: 1, kind: input, shape index: {}]   ;;  %s272_s2 = inlined_call_operand.vmem [shape: f32[1,32], index: 2, kind: input, shape index: {}]   ;;  %s273_s3 = inlined_call_operand.hbm [shape: f32[4,32], index: 3, kind: output, shape index: {}]  }
   0x1   :  { %9 = vsyncpa [#allocation6], 0 }
   0x2   :  { %10 = vsyncpa [#allocation4], 0  ;;  %s15_s14 = sshll.u32 %s270_s0, 4  ;;  %s221_s15 = smov [#allocation2]   ;;  %s16_s14 = int_to_ptr.hbm [resolvable:$true] %s15_s14 }
   0x3   :  { %s17_s16 = sshll.u32 %s221_s15, 4  ;;  %s28_s19 = sshll.u32 %s271_s1, 4  ;;  %s18_s16 = int_to_ptr.vmem [resolvable:$true] %s17_s16  ;;  %s29_s19 = int_to_ptr.hbm [resolvable:$true] %s28_s19 }
   0x4   :  { %s222_s20 = smov 64   ;;  %s223_s21 = smov 4  }
   0x5   :  { %23 = dma.hbm_to_vmem [thread:$0]  %s16_s14, 512, %s18_s16, [#allocation3], %s222_s20, %s222_s20, %s223_s21  }
   0x6   :  { %s224_s22 = smov [#allocation5]   ;;  %s225_s24 = smov 128  }
   0x7   :  { %s30_s23 = sshll.u32 %s224_s22, 4  ;;  %s226_s25 = smov 8   ;;  %s31_s23 = int_to_ptr.vmem [resolvable:$true] %s30_s23 }
   0x8   :  { %36 = dma.hbm_to_vmem [thread:$0]  %s29_s19, 512, %s31_s23, [#allocation6], %s225_s24, %s225_s24, %s226_s25  }
   0x9   :  { %215 = dma.done.wait [#allocation3], 512  }
   0xa   :  { %216 = vsyncadd [#allocation3], 4294966784 }
   0xb   :  { %217 = dma.done.wait [#allocation6], 512  }
   0xc   :  { %218 = vsyncadd [#allocation6], 4294966784  ;;  %v227_v0 = vmov 8.0   ;;  %v82_v2 = vld [vmem:[#allocation5 + $0x18] sm:$0xff]  ;;  %v81_v3 = vld [vmem:[#allocation5 + $0x10] sm:$0xff]  ;;  %vm55_vm0 = vcmask 257024  }
   0xd   :  { %141 = vrcp.f32 %v227_v0  ;;  %103 = vmatpush.msra.mxu0 %v82_v2  ;;  %v47_v4 = vld [vmem:[#allocation2] sm:$0xf]  ;;  %v48_v5 = vld [vmem:[#allocation2 + $0x4] sm:$0xf]  ;;  %v80_v6 = vld [vmem:[#allocation5 + $0x8] sm:$0xff]  ;;  %vm87_vm2 = vcmask 261120  }
   0xe   :  { %v49_v7 = vld [vmem:[#allocation2 + $0x8] sm:$0xf]  ;;  %v50_v9 = vld [vmem:[#allocation2 + $0xc] sm:$0xf]  ;;  %v79_v10 = vld [vmem:[#allocation5] sm:$0xff]  ;;  %v56_v11 = vsel %vm55_vm0, %v47_v4, 0.0 }
   0xf   :  { %104 = vmatpush.msra.mxu0 %v81_v3  ;;  %v57_v12 = vsel %vm55_vm0, %v48_v5, 0.0  ;;  %v59_v13 = vsel %vm55_vm0, %v49_v7, 0.0  ;;  %v51_v14 = vld [vmem:[#allocation2 + $0x10] sm:$0xf]  ;;  %v61_v16 = vsel %vm55_vm0, %v50_v9, 0.0  ;;  %s228_s26 = smov [#allocation7]  }
  0x10   :  { %v58_v15 = vadd.f32 %v57_v12, %v56_v11  ;;  %v52_v18 = vld [vmem:[#allocation2 + $0x14] sm:$0xf]  ;;  %v63_v20 = vsel %vm55_vm0, %v51_v14, 0.0  ;;  %v53_v22 = vld [vmem:[#allocation2 + $0x18] sm:$0xf]  ;;  %s118_s27 = sshll.u32 %s228_s26, 4  ;;  %s119_s27 = int_to_ptr.vmem [resolvable:$true] %s118_s27 }
  0x11   :  { %105 = vmatpush.msra.mxu0 %v80_v6  ;;  %v65_v24 = vsel %vm55_vm0, %v52_v18, 0.0  ;;  %v54_v25 = vld [vmem:[#allocation2 + $0x1c] sm:$0xf]  ;;  %v67_v27 = vsel %vm55_vm0, %v53_v22, 0.0  ;;  %v140_v35 = vld [vmem:[%s272_s2] ss:$0 sm:$0xff] }
  0x12   :  { %v60_v19 = vadd.f32 %v59_v13, %v58_v15  ;;  %v69_v30 = vsel %vm55_vm0, %v54_v25, 0.0  ;;  %s120_s30 = sshll.u32 %s273_s3, 4  ;;  %s121_s30 = int_to_ptr.hbm [resolvable:$true] %s120_s30 }
  0x13   :  { %v142_v1 = vpop.eup %141  ;;  %106 = vmatpush.msra.mxu0 %v79_v10 }
  0x14   :  { %v72_v8 = vmul.f32 8.0, %v142_v1  ;;  %v62_v23 = vadd.f32 %v61_v16, %v60_v19  ;;  %vm76_vm1 = vweird.f32 %v142_v1 }
  0x16   :  { %v73_v17 = vsub.f32 1.0, %v72_v8  ;;  %v64_v26 = vadd.f32 %v63_v20, %v62_v23 }
  0x18   :  { %v74_v21 = vmul.f32 %v142_v1, %v73_v17  ;;  %v66_v29 = vadd.f32 %v65_v24, %v64_v26 }
  0x1a   :  { %v75_v28 = vadd.f32 %v142_v1, %v74_v21  ;;  %v68_v31 = vadd.f32 %v67_v27, %v66_v29 }
  0x1c   :  { %v77_v32 = vsel %vm76_vm1, %v142_v1, %v75_v28  ;;  %v70_v33 = vadd.f32 %v69_v30, %v68_v31 }
  0x1e   :  { %v78_v34 = vmul.f32 %v77_v32, %v70_v33 }
  0x20   :  { %131 = vmatmul.msk.f32.vlgmr.msra.gmra.mxu0 %vm87_vm2, %v78_v34 }
  0x9d   :  { %v108_v36 = vpop.f32.mrf.mxu0 }
  0x9e   :  { %v109_v37 = vadd.f32 %v140_v35, %v108_v36 }
  0xa0   :  { %v111_v38 = vadd.f32 %v109_v37, %v78_v34 }
  0xa2   :  { %112 = vst.msk [vmem:[#allocation7] sm:$0xf] %vm55_vm0, %v111_v38 }
  0xa3   :  { %123 = dma.vmem_to_hbm [thread:$0]  %s119_s27, 64, %s121_s30, [#allocation4]  }
  0xa4   :  { %219 = dma.done.wait [#allocation4], 64  }
  0xa5   :  { %220 = vsyncadd [#allocation4], 4294967232 }
  0xa6   :  { %128 = vsyncpa [#allocation3], 1 }
  0xa7   :  { %129 = vsyncpa [#allocation6], 1 }
  0xa8   :  { %130 = vsyncpa [#allocation4], 1 }

</bundles_post_ra>
